<compile_context>
chip_gen: v7x
topology: tpu7x:2x2x1
jax: 0.10.0
libtpu: 0.0.40
codegen_flags: <defaults>
</compile_context>

<pallas_src>
import functools

import jax
import jax.numpy as jnp
from jax.experimental import pallas as pl
from jax.experimental.pallas import tpu as pltpu


# ----------------------------------------------------------------------------
# Fused kernel (all layers in one pallas_call)
# ----------------------------------------------------------------------------
def _make_fused_kernel(n_layers):
    """Kernel refs: x, (W_0, b_0), ..., (W_{L-1}, b_{L-1}), then outputs
    h_1 ... h_{L-1}, softmax_out.  Hidden layers: tanh(Linear); last: softmax."""

    def kernel(*refs):
        x_ref = refs[0]
        w_refs = [refs[1 + 2 * i] for i in range(n_layers)]
        b_refs = [refs[2 + 2 * i] for i in range(n_layers)]
        out_refs = refs[1 + 2 * n_layers:]

        # x is already bf16 (cast in the wrapper); keep activations f32 in
        # register, cast to bf16 only at the MXU inputs.
        h = x_ref[...]  # (TB, Kp) bf16
        for i in range(n_layers - 1):
            acc = jnp.dot(h.astype(jnp.bfloat16), w_refs[i][...],
                          preferred_element_type=jnp.float32)
            h = jnp.tanh(acc + b_refs[i][...])          # f32 elementwise
            out_refs[i][...] = h.astype(out_refs[i].dtype)
            # TODO(synk): emit h1 as bf16 if the target-prop caller tolerates it
            # (halves the largest HBM writeback); kept f32 to match PyTorch.

        # final layer: softmax over padded (lane-dense) N; pad-lane bias = -1e30
        logits = jnp.dot(h.astype(jnp.bfloat16), w_refs[-1][...],
                         preferred_element_type=jnp.float32)
        logits = logits + b_refs[-1][...]
        m = jnp.max(logits, axis=-1, keepdims=True)
        e = jnp.exp(logits - m)                          # pad lanes -> exactly 0
        denom = jnp.sum(e, axis=-1, keepdims=True)
        # exact divide: one (TB,1) column, negligible VPU cost, rows sum to 1.
        out_refs[-1][...] = (e / denom).astype(out_refs[-1].dtype)

    return kernel


# ----------------------------------------------------------------------------
# Parameter init / padding
# ----------------------------------------------------------------------------
def _round_up(v, m):
    return ((v + m - 1) // m) * m


def init_params(key, size_tab):
    """Mimic PyTorch nn.Linear default init (U(-1/sqrt(fan_in), +)).
    W stored as (in, out) == PyTorch weight.T."""
    params = []
    for i in range(len(size_tab) - 1):
        fan_in, fan_out = size_tab[i], size_tab[i + 1]
        key, kw, kb = jax.random.split(key, 3)
        bound = 1.0 / jnp.sqrt(fan_in)
        W = jax.random.uniform(kw, (fan_in, fan_out), jnp.float32, -bound, bound)
        b = jax.random.uniform(kb, (fan_out,), jnp.float32, -bound, bound)
        params.append((W, b))
    return params


def prepare_params(params):
    """One-time padding so every matmul dim is a multiple of 128, and weights
    cast to bf16 (MXU-native on v5e/v6e/v7x; halves weight DMA). Biases stay
    f32 (added to the f32 accumulator). Hidden layers zero-pad; the final
    layer's bias pads with -1e30 so padded lanes vanish from the softmax."""
    padded = []
    n = len(params)
    for i, (W, b) in enumerate(params):
        K, N = W.shape
        Kp, Np = _round_up(K, 128), _round_up(N, 128)
        Wp = jnp.zeros((Kp, Np), jnp.bfloat16).at[:K, :N].set(
            W.astype(jnp.bfloat16))
        fill = -1e30 if i == n - 1 else 0.0
        bp = jnp.full((1, Np), fill, jnp.float32).at[0, :N].set(
            b.astype(jnp.float32))
        padded.append((Wp, bp))
    return padded


def _choose_batch_tile(B):
    """Pad-waste-aware batch tile. Small batches: one tile (sublane-aligned).
    Large batches: biggest tile in {128..1024} with minimal pad waste, keeping
    >= 2 grid steps when B >= 512 so both v7x TensorCores get work."""
    if B <= 128:
        return max(8, _round_up(B, 8))
    best, best_cost = 128, None
    for tb in (1024, 512, 256, 128):
        bp = _round_up(B, tb)
        steps = bp // tb
        if B >= 512 and steps < 2:
            continue  # v7x megacore: keep the parallel axis >= 2 iterations
        cost = (bp - B, -tb)  # minimize pad waste, then prefer bigger tiles
        if best_cost is None or cost < best_cost:
            best, best_cost = tb, cost
    return best


# ----------------------------------------------------------------------------
# Forward (single fused pallas_call)
# ----------------------------------------------------------------------------
@functools.partial(jax.jit, static_argnames=("size_tab",))
def net_forward(x, padded_params_flat, size_tab):
    """Returns [x, h1, ..., softmax_out], matching Net.forward."""
    params = [(padded_params_flat[2 * i], padded_params_flat[2 * i + 1])
              for i in range(len(padded_params_flat) // 2)]
    n_layers = len(params)

    B, K = x.shape
    Kp = params[0][0].shape[0]
    TB = _choose_batch_tile(B)
    Bp = _round_up(B, TB)

    # pad x to (Bp, Kp) and cast to bf16: batch tile-aligned, lane dim
    # 128-aligned (unmasked vld), half the x-block DMA / VMEM per grid step.
    xp = jnp.zeros((Bp, Kp), jnp.bfloat16).at[:B, :K].set(
        x.astype(jnp.bfloat16))

    grid = (Bp // TB,)

    in_specs = [pl.BlockSpec((TB, Kp), lambda i: (i, 0))]
    inputs = [xp]
    for (W, b) in params:
        Kw, Nw = W.shape
        in_specs.append(pl.BlockSpec((Kw, Nw), lambda i: (0, 0)))  # resident
        in_specs.append(pl.BlockSpec((1, Nw), lambda i: (0, 0)))
        inputs.extend([W, b])

    out_shapes = []
    out_specs = []
    for (W, _b) in params:
        Nw = W.shape[1]
        out_shapes.append(jax.ShapeDtypeStruct((Bp, Nw), jnp.float32))
        out_specs.append(pl.BlockSpec((TB, Nw), lambda i: (i, 0)))

    # advisory cost estimate for XLA's scheduler
    flops = 0
    trans = 0
    bytes_accessed = xp.size * xp.dtype.itemsize
    prev = Kp
    for (W, b) in params:
        _, Nw = W.shape
        flops += 2 * Bp * prev * Nw
        trans += Bp * Nw                     # tanh / exp per output element
        bytes_accessed += W.size * W.dtype.itemsize + b.size * b.dtype.itemsize
        bytes_accessed += Bp * Nw * 4        # f32 output writeback
        prev = Nw

    outs = pl.pallas_call(
        _make_fused_kernel(n_layers),
        out_shape=tuple(out_shapes),
        grid=grid,
        in_specs=in_specs,
        out_specs=tuple(out_specs),
        compiler_params=pltpu.CompilerParams(
            dimension_semantics=("parallel",),
            vmem_limit_bytes=32 * 1024 * 1024),
        cost_estimate=pl.CostEstimate(flops=int(flops),
                                      transcendentals=int(trans),
                                      bytes_accessed=int(bytes_accessed)),
    )(*inputs)

    # slice padded outputs back to true (B, size_tab[l]) shapes
    activations = [x]
    for layer_out, true_n in zip(outs, size_tab[1:]):
        activations.append(layer_out[:B, :true_n])
    return activations


# ----------------------------------------------------------------------------
# Pure-JAX (f32) reference for sanity checking
# ----------------------------------------------------------------------------
def net_forward_ref(x, params):
    acts = [x]
    for (W, b) in params[:-1]:
        acts.append(jnp.tanh(acts[-1] @ W + b))
    W, b = params[-1]
    acts.append(jax.nn.softmax(acts[-1] @ W + b, axis=1))
    return acts


# TODO(synk): computeTargets / reconstruct (target-propagation training paths)
# are not part of Net.forward and are not implemented here.

if __name__ == "__main__":
    size_tab = (784, 512, 10)   # args.size_tab default
    batch = 8

    key = jax.random.PRNGKey(0)
    key, kx = jax.random.split(key)
    x = jax.random.normal(kx, (batch, size_tab[0]), jnp.float32)

    params = init_params(jax.random.PRNGKey(1), size_tab)
    padded = prepare_params(params)
    padded_flat = [t for pair in padded for t in pair]

    acts = net_forward(x, padded_flat, size_tab)
    acts = [jax.block_until_ready(a) for a in acts]

    # sanity check vs pure-f32 reference (kernel matmuls are bf16 -> loose tol)
    ref = net_forward_ref(x, params)
    assert len(acts) == len(ref)
    for idx, (a, r) in enumerate(zip(acts, ref)):
        assert a.shape == r.shape, (a.shape, r.shape)
        if idx == 0:
            assert jnp.array_equal(a, r), "input passthrough mismatch"
        else:
            assert jnp.allclose(a, r, atol=2e-2, rtol=2e-2), f"layer {idx} mismatch"
    # exact divide in the kernel -> softmax rows sum to 1 tightly
    assert jnp.allclose(jnp.sum(acts[-1], axis=1), 1.0, atol=1e-4)

    print("KERNEL_OK")
</pallas_src>

<mosaic_0001>
module attributes {stable_mosaic.version = 11 : i64} {
  func.func @kernel(%arg0: i32, %arg1: memref<8x896xbf16, #tpu.memory_space<vmem>>, %arg2: memref<896x512xbf16, #tpu.memory_space<vmem>>, %arg3: memref<1x512xf32, #tpu.memory_space<vmem>>, %arg4: memref<512x128xbf16, #tpu.memory_space<vmem>>, %arg5: memref<1x128xf32, #tpu.memory_space<vmem>>, %arg6: memref<8x512xf32, #tpu.memory_space<vmem>>, %arg7: memref<8x128xf32, #tpu.memory_space<vmem>>) attributes {dimension_semantics = [#tpu.dimension_semantics<parallel>], iteration_bounds = array<i64: 1>, scalar_prefetch = 0 : i64, scratch_operands = 0 : i64, tpu.core_type = #tpu.core_type<tc>, window_params = [{transform_indices = @transform_0, window_bounds = array<i64: 8, 896>}, {pipeline_mode = #tpu.pipeline_mode<synchronous>, transform_indices = @transform_1, window_bounds = array<i64: 896, 512>}, {pipeline_mode = #tpu.pipeline_mode<synchronous>, transform_indices = @transform_2, window_bounds = array<i64: 1, 512>}, {pipeline_mode = #tpu.pipeline_mode<synchronous>, transform_indices = @transform_3, window_bounds = array<i64: 512, 128>}, {pipeline_mode = #tpu.pipeline_mode<synchronous>, transform_indices = @transform_4, window_bounds = array<i64: 1, 128>}, {transform_indices = @transform_5, window_bounds = array<i64: 8, 512>}, {transform_indices = @transform_6, window_bounds = array<i64: 8, 128>}]} {
    %c0 = arith.constant 0 : index
    %c0_0 = arith.constant 0 : index
    %0 = vector.load %arg1[%c0, %c0_0] : memref<8x896xbf16, #tpu.memory_space<vmem>>, vector<8x896xbf16>
    %c0_1 = arith.constant 0 : index
    %c0_2 = arith.constant 0 : index
    %1 = vector.load %arg2[%c0_1, %c0_2] : memref<896x512xbf16, #tpu.memory_space<vmem>>, vector<896x512xbf16>
    %cst = arith.constant dense<0.000000e+00> : vector<8x512xf32>
    %2 = tpu.matmul %0, %1, %cst {dimension_numbers = #tpu.dot_dimension_numbers<[1], [0], [0], [1], [0, 0, 1, 1], [], []>} : vector<8x896xbf16>, vector<896x512xbf16>, vector<8x512xf32> -> vector<8x512xf32>
    %c0_3 = arith.constant 0 : index
    %c0_4 = arith.constant 0 : index
    %3 = vector.load %arg3[%c0_3, %c0_4] : memref<1x512xf32, #tpu.memory_space<vmem>>, vector<1x512xf32>
    %4 = vector.broadcast %3 : vector<1x512xf32> to vector<8x512xf32>
    %5 = arith.addf %2, %4 : vector<8x512xf32>
    %6 = math.tanh %5 : vector<8x512xf32>
    %c0_5 = arith.constant 0 : index
    %c0_6 = arith.constant 0 : index
    %7 = vector.load %arg6[%c0_5, %c0_6] : memref<8x512xf32, #tpu.memory_space<vmem>>, vector<8x512xf32>
    tpu.vector_store %arg6[%c0_5, %c0_6], %6 {strides = array<i32>} : memref<8x512xf32, #tpu.memory_space<vmem>>, vector<8x512xf32>,
    %8 = arith.truncf %6 : vector<8x512xf32> to vector<8x512xbf16>
    %c0_7 = arith.constant 0 : index
    %c0_8 = arith.constant 0 : index
    %9 = vector.load %arg4[%c0_7, %c0_8] : memref<512x128xbf16, #tpu.memory_space<vmem>>, vector<512x128xbf16>
    %cst_9 = arith.constant dense<0.000000e+00> : vector<8x128xf32>
    %10 = tpu.matmul %8, %9, %cst_9 {dimension_numbers = #tpu.dot_dimension_numbers<[1], [0], [0], [1], [0, 0, 1, 1], [], []>} : vector<8x512xbf16>, vector<512x128xbf16>, vector<8x128xf32> -> vector<8x128xf32>
    %c0_10 = arith.constant 0 : index
    %c0_11 = arith.constant 0 : index
    %11 = vector.load %arg5[%c0_10, %c0_11] : memref<1x128xf32, #tpu.memory_space<vmem>>, vector<1x128xf32>
    %12 = vector.broadcast %11 : vector<1x128xf32> to vector<8x128xf32>
    %13 = arith.addf %10, %12 : vector<8x128xf32>
    %cst_12 = arith.constant dense<0xFF800000> : vector<8xf32>
    %14 = vector.multi_reduction <maximumf>, %13, %cst_12 [1] : vector<8x128xf32> to vector<8xf32>
    %15 = vector.shape_cast %14 : vector<8xf32> to vector<8x1xf32>
    %16 = vector.broadcast %15 : vector<8x1xf32> to vector<8x128xf32>
    %17 = arith.subf %13, %16 : vector<8x128xf32>
    %18 = math.exp %17 : vector<8x128xf32>
    %cst_13 = arith.constant dense<0.000000e+00> : vector<8xf32>
    %19 = vector.multi_reduction <add>, %18, %cst_13 [1] : vector<8x128xf32> to vector<8xf32>
    %20 = vector.shape_cast %19 : vector<8xf32> to vector<8x1xf32>
    %21 = vector.broadcast %20 : vector<8x1xf32> to vector<8x128xf32>
    %22 = arith.divf %18, %21 : vector<8x128xf32>
    %c0_14 = arith.constant 0 : index
    %c0_15 = arith.constant 0 : index
    %23 = vector.load %arg7[%c0_14, %c0_15] : memref<8x128xf32, #tpu.memory_space<vmem>>, vector<8x128xf32>
    tpu.vector_store %arg7[%c0_14, %c0_15], %22 {strides = array<i32>} : memref<8x128xf32, #tpu.memory_space<vmem>>, vector<8x128xf32>,
    return
  }
  func.func @transform_0(%arg0: i32) -> (i32, i32) {
    %c0_i32 = arith.constant 0 : i32
    %c0_i32_0 = arith.constant 0 : i32
    return %arg0, %c0_i32 : i32, i32
  }
  func.func @transform_1(%arg0: i32) -> (i32, i32) {
    %c0_i32 = arith.constant 0 : i32
    %c0_i32_0 = arith.constant 0 : i32
    %c0_i32_1 = arith.constant 0 : i32
    return %c0_i32, %c0_i32_0 : i32, i32
  }
  func.func @transform_2(%arg0: i32) -> (i32, i32) {
    %c0_i32 = arith.constant 0 : i32
    %c0_i32_0 = arith.constant 0 : i32
    %c0_i32_1 = arith.constant 0 : i32
    return %c0_i32, %c0_i32_0 : i32, i32
  }
  func.func @transform_3(%arg0: i32) -> (i32, i32) {
    %c0_i32 = arith.constant 0 : i32
    %c0_i32_0 = arith.constant 0 : i32
    %c0_i32_1 = arith.constant 0 : i32
    return %c0_i32, %c0_i32_0 : i32, i32
  }
  func.func @transform_4(%arg0: i32) -> (i32, i32) {
    %c0_i32 = arith.constant 0 : i32
    %c0_i32_0 = arith.constant 0 : i32
    %c0_i32_1 = arith.constant 0 : i32
    return %c0_i32, %c0_i32_0 : i32, i32
  }
  func.func @transform_5(%arg0: i32) -> (i32, i32) {
    %c0_i32 = arith.constant 0 : i32
    %c0_i32_0 = arith.constant 0 : i32
    return %arg0, %c0_i32 : i32, i32
  }
  func.func @transform_6(%arg0: i32) -> (i32, i32) {
    %c0_i32 = arith.constant 0 : i32
    %c0_i32_0 = arith.constant 0 : i32
    return %arg0, %c0_i32 : i32, i32
  }
}

</mosaic_0001>

<bundles_post_ra>
// kernel: net_forward.1
= control target key start
LH: loop header
LB: loop body
LE: loop exit
PB: predicated region body
PF: predicated region fallthrough
CT: control target
= control target key end

     0   :  { %12 = vsyncpa [#allocation3], 0  ;;  %s3121_s0 = inlined_call_operand.vmem [shape: bf16[8,896], index: 0, kind: input, shape index: {}]   ;;  %s3122_s1 = inlined_call_operand.hbm [shape: bf16[896,512], index: 1, kind: input, shape index: {}]   ;;  %s3123_s2 = inlined_call_operand.vmem [shape: f32[1,512], index: 2, kind: input, shape index: {}]   ;;  %s3124_s3 = inlined_call_operand.hbm [shape: bf16[512,128], index: 3, kind: input, shape index: {}]   ;;  %s3125_s4 = inlined_call_operand.vmem [shape: f32[1,128], index: 4, kind: input, shape index: {}]   ;;  %s3126_s5 = inlined_call_operand.hbm [shape: f32[8,512], index: 5, kind: output, shape index: {0}]   ;;  %s3127_s6 = inlined_call_operand.hbm [shape: f32[8,128], index: 6, kind: output, shape index: {1}]  }
   0x1   :  { %13 = vsyncpa [#allocation6], 0 }
   0x2   :  { %14 = vsyncpa [#allocation4], 0 }
   0x3   :  { %15 = vsyncpa [#allocation9], 0  ;;  %s2999_s21 = smov [#allocation2]   ;;  %s2903_s25 = scalar_lea.hbm %s3122_s1, 28672 }
   0x4   :  { %s23_s22 = sshll.u32 %s2999_s21, 4  ;;  %p2904_p0 = scmp.ne.s32.totalorder %s3122_s1, %s2903_s25  ;;  %s24_s22 = int_to_ptr.vmem [resolvable:$true] %s23_s22 }
   0x5   :  { %p2907_p1 = scmp.lt.u32.totalorder %s2903_s25, %s3122_s1 }
   0x7   :  { %p2909_p2 = pnand %p2907_p1, %p2904_p0 }
   0x9   :  { %2912 = shalt.err (!%p2909_p2)
}
   0xa   :  { %s2913_s30 = scalar_lea.vmem %s24_s22, 28672  ;;  %p2918_p4 = scmp.lt.s32.totalorder %s24_s22, %s24_s22 }
   0xb   :  { %p2914_p3 = scmp.ne.s32.totalorder %s24_s22, %s2913_s30  ;;  %p2919_p5 = scmp.lt.s32.totalorder %s2913_s30, %s2913_s30 }
   0xd   :  { %p2920_p6 = por %p2919_p5, %p2918_p4 }
   0xf   :  { %p2921_p7 = pnand %p2920_p6, %p2914_p3 }
  0x11   :  { %2924 = shalt.err (!%p2921_p7)
}
  0x12   :  { %s3000_s7 = smov 256   ;;  %s3001_s8 = smov 16  }
  0x13   :  { %29 = dma.hbm_to_vmem [thread:$0]  %s3122_s1, 28672, %s24_s22, [#allocation3], %s3000_s7, %s3000_s7, %s3001_s8  }
  0x14   :  { %s3002_s11 = smov [#allocation5]   ;;  %s2925_s15 = scalar_lea.hbm %s3124_s3, 4096 }
  0x15   :  { %s37_s12 = sshll.u32 %s3002_s11, 4  ;;  %p2926_p8 = scmp.ne.s32.totalorder %s3124_s3, %s2925_s15  ;;  %s38_s12 = int_to_ptr.vmem [resolvable:$true] %s37_s12 }
  0x16   :  { %p2929_p9 = scmp.lt.u32.totalorder %s2925_s15, %s3124_s3 }
  0x18   :  { %p2931_p10 = pnand %p2929_p9, %p2926_p8 }
  0x1a   :  { %2934 = shalt.err (!%p2931_p10)
}
  0x1b   :  { %s2935_s20 = scalar_lea.vmem %s38_s12, 4096  ;;  %p2940_p12 = scmp.lt.s32.totalorder %s38_s12, %s38_s12 }
  0x1c   :  { %p2936_p11 = scmp.ne.s32.totalorder %s38_s12, %s2935_s20  ;;  %p2941_p13 = scmp.lt.s32.totalorder %s2935_s20, %s2935_s20 }
  0x1e   :  { %p2942_p0 = por %p2941_p13, %p2940_p12 }
  0x20   :  { %p2943_p1 = pnand %p2942_p0, %p2936_p11 }
  0x22   :  { %2946 = shalt.err (!%p2943_p1)
}
  0x23   :  { %s3003_s1 = smov 64   ;;  %s3004_s21 = smov 4  }
  0x24   :  { %43 = dma.hbm_to_vmem [thread:$0]  %s3124_s3, 4096, %s38_s12, [#allocation6], %s3003_s1, %s3003_s1, %s3004_s21  }
  0x25   :  { %2991 = dma.done.wait [#allocation3], 28672  }
  0x26   :  { %2992 = vsyncadd [#allocation3], 4294938624 }
  0x27   :  { %2993 = dma.done.wait [#allocation6], 4096  }
  0x28   :  { %2994 = vsyncadd [#allocation6], 4294963200  ;;  %v2516_v0 = vld [vmem:[#allocation2 + $0x4] ss:$16 sps:$4 sm:$0xff]   ;;  %v2518_v1 = vld [vmem:[#allocation2 + $0xc] ss:$16 sps:$4 sm:$0xff]  }
  0x29   :  { %1448 = vmatprep.subr.bf16.mxu0 %v2516_v0  ;;  %v2520_v2 = vld [vmem:[#allocation2] ss:$16 sps:$4 sm:$0xff]   ;;  %v2521_v3 = vld [vmem:[#allocation2 + $0x8] ss:$16 sps:$4 sm:$0xff]   ;;  %1612 = vmatprep.subr.bf16.mxu1 %v2518_v1  ;;  %v2522_v4 = vld [vmem:[#allocation2 + $0x24] ss:$16 sps:$4 sm:$0xff]  }
  0x2a   :  { %1449 = vmatpush1.bf16.msra.mxu0 %v2520_v2  ;;  %1613 = vmatpush1.bf16.msra.mxu1 %v2521_v3  ;;  %v2524_v5 = vld [vmem:[#allocation2 + $0x2c] ss:$16 sps:$4 sm:$0xff]   ;;  %v2526_v6 = vld [vmem:[#allocation2 + $0x20] ss:$16 sps:$4 sm:$0xff]   ;;  %v2527_v7 = vld [vmem:[#allocation2 + $0x28] ss:$16 sps:$4 sm:$0xff]  }
  0x2b   :  { %1450 = vmatprep.subr.bf16.mxu0 %v2522_v4  ;;  %1614 = vmatprep.subr.bf16.mxu1 %v2524_v5  ;;  %v2528_v8 = vld [vmem:[#allocation2 + $0x44] ss:$16 sps:$4 sm:$0xff]   ;;  %v2530_v9 = vld [vmem:[#allocation2 + $0x4c] ss:$16 sps:$4 sm:$0xff]   ;;  %v2532_v10 = vld [vmem:[#allocation2 + $0x40] ss:$16 sps:$4 sm:$0xff]  }
  0x2c   :  { %v2533_v11 = vld [vmem:[#allocation2 + $0x48] ss:$16 sps:$4 sm:$0xff]   ;;  %v2534_v12 = vld [vmem:[#allocation2 + $0x64] ss:$16 sps:$4 sm:$0xff]   ;;  %v2536_v13 = vld [vmem:[#allocation2 + $0x6c] ss:$16 sps:$4 sm:$0xff]  }
  0x2d   :  { %v2538_v14 = vld [vmem:[#allocation2 + $0x60] ss:$16 sps:$4 sm:$0xff]   ;;  %v2539_v15 = vld [vmem:[#allocation2 + $0x68] ss:$16 sps:$4 sm:$0xff]   ;;  %v2540_v16 = vld [vmem:[#allocation2 + $0x84] ss:$16 sps:$4 sm:$0xff]  }
  0x2e   :  { %1451 = vmatpush1.bf16.msra.mxu0 %v2526_v6  ;;  %1615 = vmatpush1.bf16.msra.mxu1 %v2527_v7  ;;  %v2542_v17 = vld [vmem:[#allocation2 + $0x8c] ss:$16 sps:$4 sm:$0xff]   ;;  %v2544_v18 = vld [vmem:[#allocation2 + $0x80] ss:$16 sps:$4 sm:$0xff]   ;;  %v2545_v19 = vld [vmem:[#allocation2 + $0x88] ss:$16 sps:$4 sm:$0xff]  }
  0x2f   :  { %1452 = vmatprep.subr.bf16.mxu0 %v2528_v8  ;;  %1616 = vmatprep.subr.bf16.mxu1 %v2530_v9  ;;  %v2546_v20 = vld [vmem:[#allocation2 + $0xa4] ss:$16 sps:$4 sm:$0xff]   ;;  %v2548_v21 = vld [vmem:[#allocation2 + $0xac] ss:$16 sps:$4 sm:$0xff]   ;;  %v2550_v22 = vld [vmem:[#allocation2 + $0xa0] ss:$16 sps:$4 sm:$0xff]  }
  0x30   :  { %v2551_v23 = vld [vmem:[#allocation2 + $0xa8] ss:$16 sps:$4 sm:$0xff]   ;;  %v2552_v24 = vld [vmem:[#allocation2 + $0xc4] ss:$16 sps:$4 sm:$0xff]   ;;  %v2554_v25 = vld [vmem:[#allocation2 + $0xcc] ss:$16 sps:$4 sm:$0xff]  }
  0x31   :  { %v2556_v26 = vld [vmem:[#allocation2 + $0xc0] ss:$16 sps:$4 sm:$0xff]   ;;  %v2557_v27 = vld [vmem:[#allocation2 + $0xc8] ss:$16 sps:$4 sm:$0xff]   ;;  %v2558_v28 = vld [vmem:[#allocation2 + $0xe4] ss:$16 sps:$4 sm:$0xff]  }
  0x32   :  { %1453 = vmatpush1.bf16.msra.mxu0 %v2532_v10  ;;  %1617 = vmatpush1.bf16.msra.mxu1 %v2533_v11  ;;  %v2560_v29 = vld [vmem:[#allocation2 + $0xec] ss:$16 sps:$4 sm:$0xff]   ;;  %v2562_v30 = vld [vmem:[#allocation2 + $0xe0] ss:$16 sps:$4 sm:$0xff]   ;;  %v2563_v31 = vld [vmem:[#allocation2 + $0xe8] ss:$16 sps:$4 sm:$0xff]  }
  0x33   :  { %1454 = vmatprep.subr.bf16.mxu0 %v2534_v12  ;;  %1618 = vmatprep.subr.bf16.mxu1 %v2536_v13  ;;  %v2564_v32 = vld [vmem:[#allocation2 + $0x104] ss:$16 sps:$4 sm:$0xff]   ;;  %v2566_v33 = vld [vmem:[#allocation2 + $0x10c] ss:$16 sps:$4 sm:$0xff]   ;;  %v2568_v34 = vld [vmem:[#allocation2 + $0x100] ss:$16 sps:$4 sm:$0xff]  }
  0x34   :  { %v2569_v35 = vld [vmem:[#allocation2 + $0x108] ss:$16 sps:$4 sm:$0xff]   ;;  %v2570_v36 = vld [vmem:[#allocation2 + $0x124] ss:$16 sps:$4 sm:$0xff]   ;;  %v2572_v37 = vld [vmem:[#allocation2 + $0x12c] ss:$16 sps:$4 sm:$0xff]  }
  0x35   :  { %v2574_v38 = vld [vmem:[#allocation2 + $0x120] ss:$16 sps:$4 sm:$0xff]   ;;  %v2575_v39 = vld [vmem:[#allocation2 + $0x128] ss:$16 sps:$4 sm:$0xff]   ;;  %v2576_v40 = vld [vmem:[#allocation2 + $0x144] ss:$16 sps:$4 sm:$0xff]  }
  0x36   :  { %1455 = vmatpush1.bf16.msra.mxu0 %v2538_v14  ;;  %1619 = vmatpush1.bf16.msra.mxu1 %v2539_v15  ;;  %v2578_v41 = vld [vmem:[#allocation2 + $0x14c] ss:$16 sps:$4 sm:$0xff]   ;;  %v2580_v42 = vld [vmem:[#allocation2 + $0x140] ss:$16 sps:$4 sm:$0xff]   ;;  %v2581_v43 = vld [vmem:[#allocation2 + $0x148] ss:$16 sps:$4 sm:$0xff]  }
  0x37   :  { %1456 = vmatprep.subr.bf16.mxu0 %v2540_v16  ;;  %1620 = vmatprep.subr.bf16.mxu1 %v2542_v17  ;;  %v2582_v44 = vld [vmem:[#allocation2 + $0x164] ss:$16 sps:$4 sm:$0xff]   ;;  %v2584_v45 = vld [vmem:[#allocation2 + $0x16c] ss:$16 sps:$4 sm:$0xff]   ;;  %v2586_v47 = vld [vmem:[#allocation2 + $0x160] ss:$16 sps:$4 sm:$0xff]  }
  0x38   :  { %v53_v46 = vld [vmem:[%s3121_s0] sm:$0xff]  ;;  %v2587_v49 = vld [vmem:[#allocation2 + $0x168] ss:$16 sps:$4 sm:$0xff]   ;;  %v2590_v51 = vld [vmem:[#allocation2 + $0x18c] ss:$16 sps:$4 sm:$0xff]   ;;  %s3006_s9 = smov [#allocation7]  }
  0x39   :  { %v2172_v48 = vcombine.high %v53_v46, %v53_v46  ;;  %v2588_v50 = vld [vmem:[#allocation2 + $0x184] ss:$16 sps:$4 sm:$0xff]   ;;  %v2592_v52 = vld [vmem:[#allocation2 + $0x180] ss:$16 sps:$4 sm:$0xff]   ;;  %v2593_v53 = vld [vmem:[#allocation2 + $0x188] ss:$16 sps:$4 sm:$0xff]   ;;  %v2171_v4 = vcombine.low %v53_v46, %v53_v46 }
  0x3a   :  { %1457 = vmatpush1.bf16.msra.mxu0 %v2544_v18  ;;  %1621 = vmatpush1.bf16.msra.mxu1 %v2545_v19  ;;  %v2594_v54 = vld [vmem:[#allocation2 + $0x1a4] ss:$16 sps:$4 sm:$0xff]   ;;  %v2596_v55 = vld [vmem:[#allocation2 + $0x1ac] ss:$16 sps:$4 sm:$0xff]   ;;  %v2598_v56 = vld [vmem:[#allocation2 + $0x1a0] ss:$16 sps:$4 sm:$0xff]  }
  0x3b   :  { %1458 = vmatprep.subr.bf16.mxu0 %v2546_v20  ;;  %1622 = vmatprep.subr.bf16.mxu1 %v2548_v21  ;;  %v2599_v57 = vld [vmem:[#allocation2 + $0x1a8] ss:$16 sps:$4 sm:$0xff]   ;;  %v2600_v58 = vld [vmem:[#allocation2 + $0x1c4] ss:$16 sps:$4 sm:$0xff]   ;;  %v2602_v59 = vld [vmem:[#allocation2 + $0x1cc] ss:$16 sps:$4 sm:$0xff]  }
  0x3c   :  { %1480 = vmatprep.mubr.bf16.mxu0 %v2172_v48  ;;  %1644 = vmatprep.mubr.bf16.mxu1 %v2172_v48  ;;  %v2604_v60 = vld [vmem:[#allocation2 + $0x1c0] ss:$16 sps:$4 sm:$0xff]   ;;  %v2605_v61 = vld [vmem:[#allocation2 + $0x1c8] ss:$16 sps:$4 sm:$0xff]   ;;  %v2606_v62 = vld [vmem:[#allocation2 + $0x1e4] ss:$16 sps:$4 sm:$0xff]  }
  0x3d   :  { %v2608_v63 = vld [vmem:[#allocation2 + $0x1ec] ss:$16 sps:$4 sm:$0xff]   ;;  %v2610_v0 = vld [vmem:[#allocation2 + $0x1e0] ss:$16 sps:$4 sm:$0xff]   ;;  %v2611_v1 = vld [vmem:[#allocation2 + $0x1e8] ss:$16 sps:$4 sm:$0xff]  }
  0x3e   :  { %1459 = vmatpush1.bf16.msra.mxu0 %v2550_v22  ;;  %1623 = vmatpush1.bf16.msra.mxu1 %v2551_v23  ;;  %v2616_v2 = vld [vmem:[#allocation2 + $0x204] ss:$16 sps:$4 sm:$0xff]   ;;  %v2619_v3 = vld [vmem:[#allocation2 + $0x20c] ss:$16 sps:$4 sm:$0xff]   ;;  %v2614_v5 = vld [vmem:[#allocation2 + $0x200] ss:$16 sps:$4 sm:$0xff]  }
  0x3f   :  { %1460 = vmatprep.subr.bf16.mxu0 %v2552_v24  ;;  %1624 = vmatprep.subr.bf16.mxu1 %v2554_v25  ;;  %v2617_v6 = vld [vmem:[#allocation2 + $0x208] ss:$16 sps:$4 sm:$0xff]   ;;  %v2622_v7 = vld [vmem:[#allocation2 + $0x224] ss:$16 sps:$4 sm:$0xff]   ;;  %v2625_v8 = vld [vmem:[#allocation2 + $0x22c] ss:$16 sps:$4 sm:$0xff]  }
  0x40   :  { %v2620_v9 = vld [vmem:[#allocation2 + $0x220] ss:$16 sps:$4 sm:$0xff]   ;;  %v2623_v10 = vld [vmem:[#allocation2 + $0x228] ss:$16 sps:$4 sm:$0xff]   ;;  %v2628_v11 = vld [vmem:[#allocation2 + $0x244] ss:$16 sps:$4 sm:$0xff]  }
  0x41   :  { %v2631_v12 = vld [vmem:[#allocation2 + $0x24c] ss:$16 sps:$4 sm:$0xff]   ;;  %v2626_v13 = vld [vmem:[#allocation2 + $0x240] ss:$16 sps:$4 sm:$0xff]   ;;  %v2629_v14 = vld [vmem:[#allocation2 + $0x248] ss:$16 sps:$4 sm:$0xff]  }
  0x42   :  { %1461 = vmatpush1.bf16.msra.mxu0 %v2556_v26  ;;  %1625 = vmatpush1.bf16.msra.mxu1 %v2557_v27  ;;  %v2634_v15 = vld [vmem:[#allocation2 + $0x264] ss:$16 sps:$4 sm:$0xff]   ;;  %v2637_v16 = vld [vmem:[#allocation2 + $0x26c] ss:$16 sps:$4 sm:$0xff]   ;;  %v2632_v17 = vld [vmem:[#allocation2 + $0x260] ss:$16 sps:$4 sm:$0xff]  }
  0x43   :  { %1462 = vmatprep.subr.bf16.mxu0 %v2558_v28  ;;  %1626 = vmatprep.subr.bf16.mxu1 %v2560_v29  ;;  %v2635_v18 = vld [vmem:[#allocation2 + $0x268] ss:$16 sps:$4 sm:$0xff]   ;;  %v2640_v19 = vld [vmem:[#allocation2 + $0x284] ss:$16 sps:$4 sm:$0xff]   ;;  %v2643_v20 = vld [vmem:[#allocation2 + $0x28c] ss:$16 sps:$4 sm:$0xff]  }
  0x44   :  { %v2638_v21 = vld [vmem:[#allocation2 + $0x280] ss:$16 sps:$4 sm:$0xff]   ;;  %v2641_v22 = vld [vmem:[#allocation2 + $0x288] ss:$16 sps:$4 sm:$0xff]   ;;  %v2646_v23 = vld [vmem:[#allocation2 + $0x2a4] ss:$16 sps:$4 sm:$0xff]  }
  0x45   :  { %v2649_v24 = vld [vmem:[#allocation2 + $0x2ac] ss:$16 sps:$4 sm:$0xff]   ;;  %v2644_v25 = vld [vmem:[#allocation2 + $0x2a0] ss:$16 sps:$4 sm:$0xff]   ;;  %v2647_v26 = vld [vmem:[#allocation2 + $0x2a8] ss:$16 sps:$4 sm:$0xff]  }
  0x46   :  { %1463 = vmatpush1.bf16.msra.mxu0 %v2562_v30  ;;  %1627 = vmatpush1.bf16.msra.mxu1 %v2563_v31  ;;  %v2652_v27 = vld [vmem:[#allocation2 + $0x2c4] ss:$16 sps:$4 sm:$0xff]   ;;  %v2655_v28 = vld [vmem:[#allocation2 + $0x2cc] ss:$16 sps:$4 sm:$0xff]   ;;  %v2650_v31 = vld [vmem:[#allocation2 + $0x2c0] ss:$16 sps:$4 sm:$0xff]  }
  0x47   :  { %1464 = vmatprep.subr.bf16.mxu0 %v2564_v32  ;;  %1628 = vmatprep.subr.bf16.mxu1 %v2566_v33  ;;  %v3073_v29 = vld [vmem:[%s3121_s0 + $0x8] sm:$0xff]  ;;  %v2658_v33 = vld [vmem:[#allocation2 + $0x2e4] ss:$16 sps:$4 sm:$0xff]   ;;  %s2147_s10 = sshll.u32 %s3006_s9, 4  ;;  %s2148_s10 = int_to_ptr.vmem [resolvable:$true] %s2147_s10 }
  0x48   :  { %v2174_v30 = vcombine.high %v3073_v29, %v3073_v29  ;;  %v2653_v32 = vld [vmem:[#allocation2 + $0x2c8] ss:$16 sps:$4 sm:$0xff]   ;;  %v2679_v46 = vld [vmem:[#allocation2 + $0x34c] ss:$16 sps:$4 sm:$0xff]   ;;  %p2952_p3 = scmp.lt.s32.totalorder %s2148_s10, %s2148_s10 }
  0x49   :  { %v2677_v48 = vld [vmem:[#allocation2 + $0x348] ss:$16 sps:$4 sm:$0xff]  }
  0x4a   :  { %1465 = vmatpush1.bf16.msra.mxu0 %v2568_v34  ;;  %1629 = vmatpush1.bf16.msra.mxu1 %v2569_v35  ;;  %v2661_v34 = vld [vmem:[#allocation2 + $0x2ec] ss:$16 sps:$4 sm:$0xff]   ;;  %v2656_v35 = vld [vmem:[#allocation2 + $0x2e0] ss:$16 sps:$4 sm:$0xff]  }
  0x4b   :  { %1466 = vmatprep.subr.bf16.mxu0 %v2570_v36  ;;  %1630 = vmatprep.subr.bf16.mxu1 %v2572_v37  ;;  %v2659_v36 = vld [vmem:[#allocation2 + $0x2e8] ss:$16 sps:$4 sm:$0xff]   ;;  %v2664_v37 = vld [vmem:[#allocation2 + $0x304] ss:$16 sps:$4 sm:$0xff]  }
  0x4e   :  { %1467 = vmatpush1.bf16.msra.mxu0 %v2574_v38  ;;  %1631 = vmatpush1.bf16.msra.mxu1 %v2575_v39  ;;  %v2667_v38 = vld [vmem:[#allocation2 + $0x30c] ss:$16 sps:$4 sm:$0xff]   ;;  %v2662_v39 = vld [vmem:[#allocation2 + $0x300] ss:$16 sps:$4 sm:$0xff]  }
  0x4f   :  { %1468 = vmatprep.subr.bf16.mxu0 %v2576_v40  ;;  %1632 = vmatprep.subr.bf16.mxu1 %v2578_v41  ;;  %v2665_v40 = vld [vmem:[#allocation2 + $0x308] ss:$16 sps:$4 sm:$0xff]   ;;  %v2670_v41 = vld [vmem:[#allocation2 + $0x324] ss:$16 sps:$4 sm:$0xff]  }
  0x52   :  { %1469 = vmatpush1.bf16.msra.mxu0 %v2580_v42  ;;  %1633 = vmatpush1.bf16.msra.mxu1 %v2581_v43  ;;  %v2673_v42 = vld [vmem:[#allocation2 + $0x32c] ss:$16 sps:$4 sm:$0xff]   ;;  %v2668_v43 = vld [vmem:[#allocation2 + $0x320] ss:$16 sps:$4 sm:$0xff]  }
  0x53   :  { %1470 = vmatprep.subr.bf16.mxu0 %v2582_v44  ;;  %1634 = vmatprep.subr.bf16.mxu1 %v2584_v45  ;;  %v2671_v44 = vld [vmem:[#allocation2 + $0x328] ss:$16 sps:$4 sm:$0xff]   ;;  %v2676_v45 = vld [vmem:[#allocation2 + $0x344] ss:$16 sps:$4 sm:$0xff]  }
  0x56   :  { %1471 = vmatpush1.bf16.msra.mxu0 %v2586_v47  ;;  %1635 = vmatpush1.bf16.msra.mxu1 %v2587_v49  ;;  %v2674_v47 = vld [vmem:[#allocation2 + $0x340] ss:$16 sps:$4 sm:$0xff]   ;;  %v2682_v49 = vld [vmem:[#allocation2 + $0x364] ss:$16 sps:$4 sm:$0xff]  }
  0x57   :  { %1472 = vmatprep.subr.bf16.mxu0 %v2588_v50  ;;  %1636 = vmatprep.subr.bf16.mxu1 %v2590_v51  ;;  %v2685_v50 = vld [vmem:[#allocation2 + $0x36c] ss:$16 sps:$4 sm:$0xff]   ;;  %v2680_v51 = vld [vmem:[#allocation2 + $0x360] ss:$16 sps:$4 sm:$0xff]  }
  0x5a   :  { %1473 = vmatpush1.bf16.msra.mxu0 %v2592_v52  ;;  %1637 = vmatpush1.bf16.msra.mxu1 %v2593_v53  ;;  %v2683_v52 = vld [vmem:[#allocation2 + $0x368] ss:$16 sps:$4 sm:$0xff]   ;;  %v2688_v53 = vld [vmem:[#allocation2 + $0x384] ss:$16 sps:$4 sm:$0xff]  }
  0x5b   :  { %1474 = vmatprep.subr.bf16.mxu0 %v2594_v54  ;;  %1638 = vmatprep.subr.bf16.mxu1 %v2596_v55  ;;  %v2691_v54 = vld [vmem:[#allocation2 + $0x38c] ss:$16 sps:$4 sm:$0xff]   ;;  %v2686_v55 = vld [vmem:[#allocation2 + $0x380] ss:$16 sps:$4 sm:$0xff]  }
  0x5e   :  { %1475 = vmatpush1.bf16.msra.mxu0 %v2598_v56  ;;  %1639 = vmatpush1.bf16.msra.mxu1 %v2599_v57  ;;  %v2689_v56 = vld [vmem:[#allocation2 + $0x388] ss:$16 sps:$4 sm:$0xff]   ;;  %v2694_v57 = vld [vmem:[#allocation2 + $0x3a4] ss:$16 sps:$4 sm:$0xff]  }
  0x5f   :  { %1476 = vmatprep.subr.bf16.mxu0 %v2600_v58  ;;  %1640 = vmatprep.subr.bf16.mxu1 %v2602_v59  ;;  %v2697_v58 = vld [vmem:[#allocation2 + $0x3ac] ss:$16 sps:$4 sm:$0xff]   ;;  %v2692_v59 = vld [vmem:[#allocation2 + $0x3a0] ss:$16 sps:$4 sm:$0xff]  }
  0x62   :  { %1477 = vmatpush1.bf16.msra.mxu0 %v2604_v60  ;;  %1641 = vmatpush1.bf16.msra.mxu1 %v2605_v61  ;;  %v2695_v60 = vld [vmem:[#allocation2 + $0x3a8] ss:$16 sps:$4 sm:$0xff]   ;;  %v2700_v61 = vld [vmem:[#allocation2 + $0x3c4] ss:$16 sps:$4 sm:$0xff]  }
  0x63   :  { %1478 = vmatprep.subr.bf16.mxu0 %v2606_v62  ;;  %1642 = vmatprep.subr.bf16.mxu1 %v2608_v63  ;;  %v2703_v62 = vld [vmem:[#allocation2 + $0x3cc] ss:$16 sps:$4 sm:$0xff]   ;;  %v2698_v63 = vld [vmem:[#allocation2 + $0x3c0] ss:$16 sps:$4 sm:$0xff]  }
  0x66   :  { %1479 = vmatpush1.bf16.msra.mxu0 %v2610_v0  ;;  %1643 = vmatpush1.bf16.msra.mxu1 %v2611_v1  ;;  %v2701_v0 = vld [vmem:[#allocation2 + $0x3c8] ss:$16 sps:$4 sm:$0xff]   ;;  %v2706_v1 = vld [vmem:[#allocation2 + $0x3e4] ss:$16 sps:$4 sm:$0xff]  }
  0x67   :  { %1489 = vmatprep.subr.bf16.mxu0 %v2616_v2  ;;  %1653 = vmatprep.subr.bf16.mxu1 %v2619_v3  ;;  %v2709_v2 = vld [vmem:[#allocation2 + $0x3ec] ss:$16 sps:$4 sm:$0xff]   ;;  %v2704_v3 = vld [vmem:[#allocation2 + $0x3e0] ss:$16 sps:$4 sm:$0xff]  }
  0x69   :  { %1481 = vmatmul.mubr.bf16.vlgmr.msra.gmra.mrb[0].mxu0 %v2171_v4  ;;  %1645 = vmatmul.mubr.bf16.vlgmr.msra.gmra.mrb[0].mxu1 %v2171_v4  ;;  %v2707_v4 = vld [vmem:[#allocation2 + $0x3e8] ss:$16 sps:$4 sm:$0xff]  }
  0x6a   :  { %1490 = vmatpush1.bf16.msra.mxu0 %v2614_v5  ;;  %1654 = vmatpush1.bf16.msra.mxu1 %v2617_v6  ;;  %v2714_v5 = vld [vmem:[#allocation2 + $0x404] ss:$16 sps:$4 sm:$0xff]   ;;  %v2717_v6 = vld [vmem:[#allocation2 + $0x40c] ss:$16 sps:$4 sm:$0xff]  }
  0x6b   :  { %1491 = vmatprep.subr.bf16.mxu0 %v2622_v7  ;;  %1655 = vmatprep.subr.bf16.mxu1 %v2625_v8  ;;  %v2173_v7 = vcombine.low %v3073_v29, %v3073_v29  ;;  %v2712_v8 = vld [vmem:[#allocation2 + $0x400] ss:$16 sps:$4 sm:$0xff]   ;;  %v2747_v29 = vld [vmem:[#allocation2 + $0x4ac] ss:$16 sps:$4 sm:$0xff]  }
  0x6c   :  { %1521 = vmatprep.mubr.bf16.mxu0 %v2174_v30  ;;  %1685 = vmatprep.mubr.bf16.mxu1 %v2174_v30  ;;  %v2742_v30 = vld [vmem:[#allocation2 + $0x4a0] ss:$16 sps:$4 sm:$0xff]  }
  0x6e   :  { %1492 = vmatpush1.bf16.msra.mxu0 %v2620_v9  ;;  %1656 = vmatpush1.bf16.msra.mxu1 %v2623_v10  ;;  %v2715_v9 = vld [vmem:[#allocation2 + $0x408] ss:$16 sps:$4 sm:$0xff]   ;;  %v2720_v10 = vld [vmem:[#allocation2 + $0x424] ss:$16 sps:$4 sm:$0xff]  }
  0x6f   :  { %1493 = vmatprep.subr.bf16.mxu0 %v2628_v11  ;;  %1657 = vmatprep.subr.bf16.mxu1 %v2631_v12  ;;  %v3082_v11 = vld [vmem:[%s3121_s0 + $0x10] sm:$0xff]  ;;  %v2723_v12 = vld [vmem:[#allocation2 + $0x42c] ss:$16 sps:$4 sm:$0xff]  }
  0x72   :  { %1494 = vmatpush1.bf16.msra.mxu0 %v2626_v13  ;;  %1658 = vmatpush1.bf16.msra.mxu1 %v2629_v14  ;;  %v2176_v13 = vcombine.high %v3082_v11, %v3082_v11  ;;  %v2718_v14 = vld [vmem:[#allocation2 + $0x420] ss:$16 sps:$4 sm:$0xff]  }
  0x73   :  { %1495 = vmatprep.subr.bf16.mxu0 %v2634_v15  ;;  %1659 = vmatprep.subr.bf16.mxu1 %v2637_v16  ;;  %v2721_v15 = vld [vmem:[#allocation2 + $0x428] ss:$16 sps:$4 sm:$0xff]   ;;  %v2726_v16 = vld [vmem:[#allocation2 + $0x444] ss:$16 sps:$4 sm:$0xff]  }
  0x76   :  { %1496 = vmatpush1.bf16.msra.mxu0 %v2632_v17  ;;  %1660 = vmatpush1.bf16.msra.mxu1 %v2635_v18  ;;  %v2729_v17 = vld [vmem:[#allocation2 + $0x44c] ss:$16 sps:$4 sm:$0xff]   ;;  %v2724_v18 = vld [vmem:[#allocation2 + $0x440] ss:$16 sps:$4 sm:$0xff]  }
  0x77   :  { %1497 = vmatprep.subr.bf16.mxu0 %v2640_v19  ;;  %1661 = vmatprep.subr.bf16.mxu1 %v2643_v20  ;;  %v2727_v19 = vld [vmem:[#allocation2 + $0x448] ss:$16 sps:$4 sm:$0xff]   ;;  %v2732_v20 = vld [vmem:[#allocation2 + $0x464] ss:$16 sps:$4 sm:$0xff]  }
  0x7a   :  { %1498 = vmatpush1.bf16.msra.mxu0 %v2638_v21  ;;  %1662 = vmatpush1.bf16.msra.mxu1 %v2641_v22  ;;  %v2735_v21 = vld [vmem:[#allocation2 + $0x46c] ss:$16 sps:$4 sm:$0xff]   ;;  %v2730_v22 = vld [vmem:[#allocation2 + $0x460] ss:$16 sps:$4 sm:$0xff]  }
  0x7b   :  { %1499 = vmatprep.subr.bf16.mxu0 %v2646_v23  ;;  %1663 = vmatprep.subr.bf16.mxu1 %v2649_v24  ;;  %v2733_v23 = vld [vmem:[#allocation2 + $0x468] ss:$16 sps:$4 sm:$0xff]   ;;  %v2738_v24 = vld [vmem:[#allocation2 + $0x484] ss:$16 sps:$4 sm:$0xff]  }
  0x7e   :  { %1500 = vmatpush1.bf16.msra.mxu0 %v2644_v25  ;;  %1664 = vmatpush1.bf16.msra.mxu1 %v2647_v26  ;;  %v2741_v25 = vld [vmem:[#allocation2 + $0x48c] ss:$16 sps:$4 sm:$0xff]   ;;  %v2736_v26 = vld [vmem:[#allocation2 + $0x480] ss:$16 sps:$4 sm:$0xff]  }
  0x7f   :  { %1501 = vmatprep.subr.bf16.mxu0 %v2652_v27  ;;  %1665 = vmatprep.subr.bf16.mxu1 %v2655_v28  ;;  %v2739_v27 = vld [vmem:[#allocation2 + $0x488] ss:$16 sps:$4 sm:$0xff]   ;;  %v2744_v28 = vld [vmem:[#allocation2 + $0x4a4] ss:$16 sps:$4 sm:$0xff]  }
  0x82   :  { %1502 = vmatpush1.bf16.msra.mxu0 %v2650_v31  ;;  %1666 = vmatpush1.bf16.msra.mxu1 %v2653_v32  ;;  %v2745_v31 = vld [vmem:[#allocation2 + $0x4a8] ss:$16 sps:$4 sm:$0xff]   ;;  %v2750_v32 = vld [vmem:[#allocation2 + $0x4c4] ss:$16 sps:$4 sm:$0xff]  }
  0x83   :  { %1503 = vmatprep.subr.bf16.mxu0 %v2658_v33  ;;  %1667 = vmatprep.subr.bf16.mxu1 %v2661_v34  ;;  %v2753_v33 = vld [vmem:[#allocation2 + $0x4cc] ss:$16 sps:$4 sm:$0xff]   ;;  %v2748_v34 = vld [vmem:[#allocation2 + $0x4c0] ss:$16 sps:$4 sm:$0xff]  }
  0x86   :  { %1504 = vmatpush1.bf16.msra.mxu0 %v2656_v35  ;;  %1668 = vmatpush1.bf16.msra.mxu1 %v2659_v36  ;;  %v2751_v35 = vld [vmem:[#allocation2 + $0x4c8] ss:$16 sps:$4 sm:$0xff]   ;;  %v2756_v36 = vld [vmem:[#allocation2 + $0x4e4] ss:$16 sps:$4 sm:$0xff]  }
  0x87   :  { %1505 = vmatprep.subr.bf16.mxu0 %v2664_v37  ;;  %1669 = vmatprep.subr.bf16.mxu1 %v2667_v38  ;;  %v2759_v37 = vld [vmem:[#allocation2 + $0x4ec] ss:$16 sps:$4 sm:$0xff]   ;;  %v2754_v38 = vld [vmem:[#allocation2 + $0x4e0] ss:$16 sps:$4 sm:$0xff]  }
  0x8a   :  { %1506 = vmatpush1.bf16.msra.mxu0 %v2662_v39  ;;  %1670 = vmatpush1.bf16.msra.mxu1 %v2665_v40  ;;  %v2757_v39 = vld [vmem:[#allocation2 + $0x4e8] ss:$16 sps:$4 sm:$0xff]   ;;  %v2762_v40 = vld [vmem:[#allocation2 + $0x504] ss:$16 sps:$4 sm:$0xff]  }
  0x8b   :  { %1507 = vmatprep.subr.bf16.mxu0 %v2670_v41  ;;  %1671 = vmatprep.subr.bf16.mxu1 %v2673_v42  ;;  %v2765_v41 = vld [vmem:[#allocation2 + $0x50c] ss:$16 sps:$4 sm:$0xff]   ;;  %v2760_v42 = vld [vmem:[#allocation2 + $0x500] ss:$16 sps:$4 sm:$0xff]  }
  0x8e   :  { %1508 = vmatpush1.bf16.msra.mxu0 %v2668_v43  ;;  %1672 = vmatpush1.bf16.msra.mxu1 %v2671_v44  ;;  %v2763_v43 = vld [vmem:[#allocation2 + $0x508] ss:$16 sps:$4 sm:$0xff]   ;;  %v2768_v44 = vld [vmem:[#allocation2 + $0x524] ss:$16 sps:$4 sm:$0xff]  }
  0x8f   :  { %1509 = vmatprep.subr.bf16.mxu0 %v2676_v45  ;;  %1673 = vmatprep.subr.bf16.mxu1 %v2679_v46  ;;  %v2771_v45 = vld [vmem:[#allocation2 + $0x52c] ss:$16 sps:$4 sm:$0xff]   ;;  %v2766_v46 = vld [vmem:[#allocation2 + $0x520] ss:$16 sps:$4 sm:$0xff]  }
  0x92   :  { %1510 = vmatpush1.bf16.msra.mxu0 %v2674_v47  ;;  %1674 = vmatpush1.bf16.msra.mxu1 %v2677_v48  ;;  %v2769_v47 = vld [vmem:[#allocation2 + $0x528] ss:$16 sps:$4 sm:$0xff]   ;;  %v2774_v48 = vld [vmem:[#allocation2 + $0x544] ss:$16 sps:$4 sm:$0xff]  }
  0x93   :  { %1511 = vmatprep.subr.bf16.mxu0 %v2682_v49  ;;  %1675 = vmatprep.subr.bf16.mxu1 %v2685_v50  ;;  %v2777_v49 = vld [vmem:[#allocation2 + $0x54c] ss:$16 sps:$4 sm:$0xff]   ;;  %v2772_v50 = vld [vmem:[#allocation2 + $0x540] ss:$16 sps:$4 sm:$0xff]  }
  0x96   :  { %1512 = vmatpush1.bf16.msra.mxu0 %v2680_v51  ;;  %1676 = vmatpush1.bf16.msra.mxu1 %v2683_v52  ;;  %v2775_v51 = vld [vmem:[#allocation2 + $0x548] ss:$16 sps:$4 sm:$0xff]   ;;  %v2780_v52 = vld [vmem:[#allocation2 + $0x564] ss:$16 sps:$4 sm:$0xff]  }
  0x97   :  { %1513 = vmatprep.subr.bf16.mxu0 %v2688_v53  ;;  %1677 = vmatprep.subr.bf16.mxu1 %v2691_v54  ;;  %v2783_v53 = vld [vmem:[#allocation2 + $0x56c] ss:$16 sps:$4 sm:$0xff]   ;;  %v2778_v54 = vld [vmem:[#allocation2 + $0x560] ss:$16 sps:$4 sm:$0xff]  }
  0x9a   :  { %1514 = vmatpush1.bf16.msra.mxu0 %v2686_v55  ;;  %1678 = vmatpush1.bf16.msra.mxu1 %v2689_v56  ;;  %v2781_v55 = vld [vmem:[#allocation2 + $0x568] ss:$16 sps:$4 sm:$0xff]   ;;  %v2786_v56 = vld [vmem:[#allocation2 + $0x584] ss:$16 sps:$4 sm:$0xff]  }
  0x9b   :  { %1515 = vmatprep.subr.bf16.mxu0 %v2694_v57  ;;  %1679 = vmatprep.subr.bf16.mxu1 %v2697_v58  ;;  %v2789_v57 = vld [vmem:[#allocation2 + $0x58c] ss:$16 sps:$4 sm:$0xff]   ;;  %v2784_v58 = vld [vmem:[#allocation2 + $0x580] ss:$16 sps:$4 sm:$0xff]  }
  0x9e   :  { %1516 = vmatpush1.bf16.msra.mxu0 %v2692_v59  ;;  %1680 = vmatpush1.bf16.msra.mxu1 %v2695_v60  ;;  %v2787_v59 = vld [vmem:[#allocation2 + $0x588] ss:$16 sps:$4 sm:$0xff]   ;;  %v2792_v60 = vld [vmem:[#allocation2 + $0x5a4] ss:$16 sps:$4 sm:$0xff]  }
  0x9f   :  { %1517 = vmatprep.subr.bf16.mxu0 %v2700_v61  ;;  %1681 = vmatprep.subr.bf16.mxu1 %v2703_v62  ;;  %v2795_v61 = vld [vmem:[#allocation2 + $0x5ac] ss:$16 sps:$4 sm:$0xff]   ;;  %v2790_v62 = vld [vmem:[#allocation2 + $0x5a0] ss:$16 sps:$4 sm:$0xff]  }
  0xa2   :  { %1518 = vmatpush1.bf16.msra.mxu0 %v2698_v63  ;;  %1682 = vmatpush1.bf16.msra.mxu1 %v2701_v0  ;;  %v2793_v63 = vld [vmem:[#allocation2 + $0x5a8] ss:$16 sps:$4 sm:$0xff]   ;;  %v2798_v0 = vld [vmem:[#allocation2 + $0x5c4] ss:$16 sps:$4 sm:$0xff]  }
  0xa3   :  { %1519 = vmatprep.subr.bf16.mxu0 %v2706_v1  ;;  %1683 = vmatprep.subr.bf16.mxu1 %v2709_v2  ;;  %v2801_v1 = vld [vmem:[#allocation2 + $0x5cc] ss:$16 sps:$4 sm:$0xff]   ;;  %v2796_v2 = vld [vmem:[#allocation2 + $0x5c0] ss:$16 sps:$4 sm:$0xff]  }
  0xa6   :  { %1520 = vmatpush1.bf16.msra.mxu0 %v2704_v3  ;;  %1684 = vmatpush1.bf16.msra.mxu1 %v2707_v4  ;;  %v2799_v3 = vld [vmem:[#allocation2 + $0x5c8] ss:$16 sps:$4 sm:$0xff]   ;;  %v2804_v4 = vld [vmem:[#allocation2 + $0x5e4] ss:$16 sps:$4 sm:$0xff]  }
  0xa7   :  { %1530 = vmatprep.subr.bf16.mxu0 %v2714_v5  ;;  %1694 = vmatprep.subr.bf16.mxu1 %v2717_v6  ;;  %v2807_v5 = vld [vmem:[#allocation2 + $0x5ec] ss:$16 sps:$4 sm:$0xff]   ;;  %v2802_v6 = vld [vmem:[#allocation2 + $0x5e0] ss:$16 sps:$4 sm:$0xff]  }
  0xa9   :  { %1522 = vmatmul.mubr.bf16.vlgmr.msra.gmra.mrb[0].mxu0 %v2173_v7  ;;  %1686 = vmatmul.mubr.bf16.vlgmr.msra.gmra.mrb[0].mxu1 %v2173_v7  ;;  %v2805_v7 = vld [vmem:[#allocation2 + $0x5e8] ss:$16 sps:$4 sm:$0xff]  }
  0xaa   :  { %1531 = vmatpush1.bf16.msra.mxu0 %v2712_v8  ;;  %1695 = vmatpush1.bf16.msra.mxu1 %v2715_v9  ;;  %v2812_v8 = vld [vmem:[#allocation2 + $0x604] ss:$16 sps:$4 sm:$0xff]   ;;  %v2815_v9 = vld [vmem:[#allocation2 + $0x60c] ss:$16 sps:$4 sm:$0xff]  }
  0xab   :  { %1532 = vmatprep.subr.bf16.mxu0 %v2720_v10  ;;  %1696 = vmatprep.subr.bf16.mxu1 %v2723_v12  ;;  %v2175_v10 = vcombine.low %v3082_v11, %v3082_v11  ;;  %v2810_v12 = vld [vmem:[#allocation2 + $0x600] ss:$16 sps:$4 sm:$0xff]  }
  0xac   :  { %1562 = vmatprep.mubr.bf16.mxu0 %v2176_v13  ;;  %1726 = vmatprep.mubr.bf16.mxu1 %v2176_v13  ;;  %v2813_v13 = vld [vmem:[#allocation2 + $0x608] ss:$16 sps:$4 sm:$0xff]   ;;  %v2822_v11 = vld [vmem:[#allocation2 + $0x640] ss:$16 sps:$4 sm:$0xff]  }
  0xae   :  { %1533 = vmatpush1.bf16.msra.mxu0 %v2718_v14  ;;  %1697 = vmatpush1.bf16.msra.mxu1 %v2721_v15  ;;  %v2818_v14 = vld [vmem:[#allocation2 + $0x624] ss:$16 sps:$4 sm:$0xff]   ;;  %v2821_v15 = vld [vmem:[#allocation2 + $0x62c] ss:$16 sps:$4 sm:$0xff]  }
  0xaf   :  { %1534 = vmatprep.subr.bf16.mxu0 %v2726_v16  ;;  %1698 = vmatprep.subr.bf16.mxu1 %v2729_v17  ;;  %v2816_v16 = vld [vmem:[#allocation2 + $0x620] ss:$16 sps:$4 sm:$0xff]   ;;  %v2819_v17 = vld [vmem:[#allocation2 + $0x628] ss:$16 sps:$4 sm:$0xff]  }
  0xb2   :  { %1535 = vmatpush1.bf16.msra.mxu0 %v2724_v18  ;;  %1699 = vmatpush1.bf16.msra.mxu1 %v2727_v19  ;;  %v2824_v18 = vld [vmem:[#allocation2 + $0x644] ss:$16 sps:$4 sm:$0xff]   ;;  %v2827_v19 = vld [vmem:[#allocation2 + $0x64c] ss:$16 sps:$4 sm:$0xff]  }
  0xb3   :  { %1536 = vmatprep.subr.bf16.mxu0 %v2732_v20  ;;  %1700 = vmatprep.subr.bf16.mxu1 %v2735_v21  ;;  %v3005_v20 = vmov 0   ;;  %v2825_v21 = vld [vmem:[#allocation2 + $0x648] ss:$16 sps:$4 sm:$0xff]  }
  0xb6   :  { %1537 = vmatpush1.bf16.msra.mxu0 %v2730_v22  ;;  %1701 = vmatpush1.bf16.msra.mxu1 %v2733_v23  ;;  %v2830_v22 = vld [vmem:[#allocation2 + $0x664] ss:$16 sps:$4 sm:$0xff]   ;;  %v2833_v23 = vld [vmem:[#allocation2 + $0x66c] ss:$16 sps:$4 sm:$0xff]  }
  0xb7   :  { %1538 = vmatprep.subr.bf16.mxu0 %v2738_v24  ;;  %1702 = vmatprep.subr.bf16.mxu1 %v2741_v25  ;;  %v2828_v24 = vld [vmem:[#allocation2 + $0x660] ss:$16 sps:$4 sm:$0xff]   ;;  %v2831_v25 = vld [vmem:[#allocation2 + $0x668] ss:$16 sps:$4 sm:$0xff]  }
  0xba   :  { %1539 = vmatpush1.bf16.msra.mxu0 %v2736_v26  ;;  %1703 = vmatpush1.bf16.msra.mxu1 %v2739_v27  ;;  %v2836_v26 = vld [vmem:[#allocation2 + $0x684] ss:$16 sps:$4 sm:$0xff]   ;;  %v2839_v27 = vld [vmem:[#allocation2 + $0x68c] ss:$16 sps:$4 sm:$0xff]  }
  0xbb   :  { %1540 = vmatprep.subr.bf16.mxu0 %v2744_v28  ;;  %1704 = vmatprep.subr.bf16.mxu1 %v2747_v29  ;;  %v2834_v28 = vld [vmem:[#allocation2 + $0x680] ss:$16 sps:$4 sm:$0xff]   ;;  %v2837_v29 = vld [vmem:[#allocation2 + $0x688] ss:$16 sps:$4 sm:$0xff]  }
  0xbe   :  { %1541 = vmatpush1.bf16.msra.mxu0 %v2742_v30  ;;  %1705 = vmatpush1.bf16.msra.mxu1 %v2745_v31  ;;  %v2842_v30 = vld [vmem:[#allocation2 + $0x6a4] ss:$16 sps:$4 sm:$0xff]   ;;  %v2845_v31 = vld [vmem:[#allocation2 + $0x6ac] ss:$16 sps:$4 sm:$0xff]  }
  0xbf   :  { %1542 = vmatprep.subr.bf16.mxu0 %v2750_v32  ;;  %1706 = vmatprep.subr.bf16.mxu1 %v2753_v33  ;;  %v2840_v32 = vld [vmem:[#allocation2 + $0x6a0] ss:$16 sps:$4 sm:$0xff]   ;;  %v2843_v33 = vld [vmem:[#allocation2 + $0x6a8] ss:$16 sps:$4 sm:$0xff]  }
  0xc2   :  { %1543 = vmatpush1.bf16.msra.mxu0 %v2748_v34  ;;  %1707 = vmatpush1.bf16.msra.mxu1 %v2751_v35  ;;  %v2848_v34 = vld [vmem:[#allocation2 + $0x6c4] ss:$16 sps:$4 sm:$0xff]   ;;  %v2851_v35 = vld [vmem:[#allocation2 + $0x6cc] ss:$16 sps:$4 sm:$0xff]  }
  0xc3   :  { %1544 = vmatprep.subr.bf16.mxu0 %v2756_v36  ;;  %1708 = vmatprep.subr.bf16.mxu1 %v2759_v37  ;;  %v2846_v36 = vld [vmem:[#allocation2 + $0x6c0] ss:$16 sps:$4 sm:$0xff]   ;;  %v2849_v37 = vld [vmem:[#allocation2 + $0x6c8] ss:$16 sps:$4 sm:$0xff]  }
  0xc6   :  { %1545 = vmatpush1.bf16.msra.mxu0 %v2754_v38  ;;  %1709 = vmatpush1.bf16.msra.mxu1 %v2757_v39  ;;  %v2854_v38 = vld [vmem:[#allocation2 + $0x6e4] ss:$16 sps:$4 sm:$0xff]   ;;  %v2857_v39 = vld [vmem:[#allocation2 + $0x6ec] ss:$16 sps:$4 sm:$0xff]  }
  0xc7   :  { %1546 = vmatprep.subr.bf16.mxu0 %v2762_v40  ;;  %1710 = vmatprep.subr.bf16.mxu1 %v2765_v41  ;;  %v2852_v40 = vld [vmem:[#allocation2 + $0x6e0] ss:$16 sps:$4 sm:$0xff]   ;;  %v2855_v41 = vld [vmem:[#allocation2 + $0x6e8] ss:$16 sps:$4 sm:$0xff]  }
  0xca   :  { %1547 = vmatpush1.bf16.msra.mxu0 %v2760_v42  ;;  %1711 = vmatpush1.bf16.msra.mxu1 %v2763_v43  ;;  %v2859_v42 = vld [vmem:[#allocation5 + $0x40] sm:$0xff]  }
  0xcb   :  { %1548 = vmatprep.subr.bf16.mxu0 %v2768_v44  ;;  %1712 = vmatprep.subr.bf16.mxu1 %v2771_v45  ;;  %v2860_v43 = vld [vmem:[#allocation5 + $0xc0] sm:$0xff]   ;;  %v2858_v44 = vld [vmem:[%s3121_s0 + $0x18] ss:$0 sps:$4 sm:$0xff]  }
  0xcc   :  { %v2861_v45 = vld [vmem:[#allocation5] sm:$0xff]  }
  0xce   :  { %1549 = vmatpush1.bf16.msra.mxu0 %v2766_v46  ;;  %1713 = vmatpush1.bf16.msra.mxu1 %v2769_v47  ;;  %v2862_v46 = vld [vmem:[#allocation5 + $0x80] sm:$0xff]   ;;  %v2863_v47 = vld [vmem:[#allocation5 + $0x48] sm:$0xff]  }
  0xcf   :  { %1550 = vmatprep.subr.bf16.mxu0 %v2774_v48  ;;  %1714 = vmatprep.subr.bf16.mxu1 %v2777_v49  ;;  %v2864_v48 = vld [vmem:[#allocation5 + $0xc8] sm:$0xff]  }
  0xd0   :  { %v2865_v49 = vld [vmem:[#allocation5 + $0x8] sm:$0xff]  }
  0xd2   :  { %1551 = vmatpush1.bf16.msra.mxu0 %v2772_v50  ;;  %1715 = vmatpush1.bf16.msra.mxu1 %v2775_v51  ;;  %v2866_v50 = vld [vmem:[#allocation5 + $0x88] sm:$0xff]   ;;  %v2867_v51 = vld [vmem:[#allocation5 + $0x50] sm:$0xff]  }
  0xd3   :  { %1552 = vmatprep.subr.bf16.mxu0 %v2780_v52  ;;  %1716 = vmatprep.subr.bf16.mxu1 %v2783_v53  ;;  %v2868_v52 = vld [vmem:[#allocation5 + $0xd0] sm:$0xff]  }
  0xd4   :  { %v2869_v53 = vld [vmem:[#allocation5 + $0x10] sm:$0xff]  }
  0xd6   :  { %1553 = vmatpush1.bf16.msra.mxu0 %v2778_v54  ;;  %1717 = vmatpush1.bf16.msra.mxu1 %v2781_v55  ;;  %v2870_v54 = vld [vmem:[#allocation5 + $0x90] sm:$0xff]   ;;  %v2871_v55 = vld [vmem:[#allocation5 + $0x58] sm:$0xff]  }
  0xd7   :  { %1554 = vmatprep.subr.bf16.mxu0 %v2786_v56  ;;  %1718 = vmatprep.subr.bf16.mxu1 %v2789_v57  ;;  %v2872_v56 = vld [vmem:[#allocation5 + $0xd8] sm:$0xff]  }
  0xd8   :  { %v2873_v57 = vld [vmem:[#allocation5 + $0x18] sm:$0xff]  }
  0xda   :  { %1555 = vmatpush1.bf16.msra.mxu0 %v2784_v58  ;;  %1719 = vmatpush1.bf16.msra.mxu1 %v2787_v59  ;;  %v2874_v58 = vld [vmem:[#allocation5 + $0x98] sm:$0xff]   ;;  %v2875_v59 = vld [vmem:[#allocation5 + $0x60] sm:$0xff]  }
  0xdb   :  { %1556 = vmatprep.subr.bf16.mxu0 %v2792_v60  ;;  %1720 = vmatprep.subr.bf16.mxu1 %v2795_v61  ;;  %v2876_v60 = vld [vmem:[#allocation5 + $0xe0] sm:$0xff]  }
  0xdc   :  { %v2877_v61 = vld [vmem:[#allocation5 + $0x20] sm:$0xff]  }
  0xde   :  { %1557 = vmatpush1.bf16.msra.mxu0 %v2790_v62  ;;  %1721 = vmatpush1.bf16.msra.mxu1 %v2793_v63  ;;  %v2878_v62 = vld [vmem:[#allocation5 + $0xa0] sm:$0xff]   ;;  %v2879_v63 = vld [vmem:[#allocation5 + $0x68] sm:$0xff]  }
  0xdf   :  { %1558 = vmatprep.subr.bf16.mxu0 %v2798_v0  ;;  %1722 = vmatprep.subr.bf16.mxu1 %v2801_v1  ;;  %v2880_v0 = vld [vmem:[#allocation5 + $0xe8] sm:$0xff]  }
  0xe0   :  { %v2881_v1 = vld [vmem:[#allocation5 + $0x28] sm:$0xff]  }
  0xe2   :  { %1559 = vmatpush1.bf16.msra.mxu0 %v2796_v2  ;;  %1723 = vmatpush1.bf16.msra.mxu1 %v2799_v3  ;;  %v2882_v2 = vld [vmem:[#allocation5 + $0xa8] sm:$0xff]   ;;  %v2883_v3 = vld [vmem:[#allocation5 + $0x70] sm:$0xff]  }
  0xe3   :  { %1560 = vmatprep.subr.bf16.mxu0 %v2804_v4  ;;  %1724 = vmatprep.subr.bf16.mxu1 %v2807_v5  ;;  %v2884_v4 = vld [vmem:[#allocation5 + $0xf0] sm:$0xff]  }
  0xe4   :  { %v2885_v5 = vld [vmem:[#allocation5 + $0x30] sm:$0xff]  }
  0xe6   :  { %1561 = vmatpush1.bf16.msra.mxu0 %v2802_v6  ;;  %1725 = vmatpush1.bf16.msra.mxu1 %v2805_v7  ;;  %v2886_v6 = vld [vmem:[#allocation5 + $0xb0] sm:$0xff]   ;;  %v2887_v7 = vld [vmem:[#allocation5 + $0x78] sm:$0xff]  }
  0xe7   :  { %1571 = vmatprep.subr.bf16.mxu0 %v2812_v8  ;;  %1735 = vmatprep.subr.bf16.mxu1 %v2815_v9  ;;  %v2888_v8 = vld [vmem:[#allocation5 + $0xf8] sm:$0xff]  }
  0xe8   :  { %v2889_v9 = vld [vmem:[#allocation5 + $0x38] sm:$0xff]  }
  0xe9   :  { %1563 = vmatmul.mubr.bf16.vlgmr.msra.gmra.mrb[0].mxu0 %v2175_v10  ;;  %1727 = vmatmul.mubr.bf16.vlgmr.msra.gmra.mrb[0].mxu1 %v2175_v10  ;;  %v2890_v10 = vld [vmem:[#allocation5 + $0xb8] sm:$0xff]  }
  0xea   :  { %1572 = vmatpush1.bf16.msra.mxu0 %v2810_v12  ;;  %1736 = vmatpush1.bf16.msra.mxu1 %v2813_v13  ;;  %v283_v12 = vlaneseq }
  0xeb   :  { %1573 = vmatprep.subr.bf16.mxu0 %v2818_v14  ;;  %1737 = vmatprep.subr.bf16.mxu1 %v2821_v15 }
  0xec   :  { %1603 = vmatprep.mubr.bf16.mxu0 %v3005_v20  ;;  %1767 = vmatprep.mubr.bf16.mxu1 %v3005_v20  ;;  %v284_v13 = vshrl.u32 %v283_v12, 7 }
  0xee   :  { %1574 = vmatpush1.bf16.msra.mxu0 %v2816_v16  ;;  %1738 = vmatpush1.bf16.msra.mxu1 %v2819_v17  ;;  %v285_v14 = vsub.s32 0, %v284_v13  ;;  %v293_v15 = vsub.s32 2, %v284_v13  ;;  %v281_v16 = vld [vmem:[%s3123_s2] sm:$0xf]  ;;  %v289_v17 = vsub.s32 1, %v284_v13 }
  0xef   :  { %1575 = vmatprep.subr.bf16.mxu0 %v2824_v18  ;;  %1739 = vmatprep.subr.bf16.mxu1 %v2827_v19  ;;  %v297_v18 = vsub.s32 3, %v284_v13 }
  0xf0   :  { %v286_v19 = vrot.slane %v281_v16, %v285_v14  ;;  %v294_v20 = vrot.slane %v281_v16, %v293_v15 }
  0xf2   :  { %1576 = vmatpush1.bf16.msra.mxu0 %v2822_v11  ;;  %1740 = vmatpush1.bf16.msra.mxu1 %v2825_v21  ;;  %v290_v11 = vrot.slane %v281_v16, %v289_v17  ;;  %v298_v21 = vrot.slane %v281_v16, %v297_v18 }
  0xf3   :  { %1577 = vmatprep.subr.bf16.mxu0 %v2830_v22  ;;  %1741 = vmatprep.subr.bf16.mxu1 %v2833_v23 }
  0xf6   :  { %1578 = vmatpush1.bf16.msra.mxu0 %v2828_v24  ;;  %1742 = vmatpush1.bf16.msra.mxu1 %v2831_v25 }
  0xf7   :  { %1579 = vmatprep.subr.bf16.mxu0 %v2836_v26  ;;  %1743 = vmatprep.subr.bf16.mxu1 %v2839_v27 }
  0xfa   :  { %1580 = vmatpush1.bf16.msra.mxu0 %v2834_v28  ;;  %1744 = vmatpush1.bf16.msra.mxu1 %v2837_v29 }
  0xfb   :  { %1581 = vmatprep.subr.bf16.mxu0 %v2842_v30  ;;  %1745 = vmatprep.subr.bf16.mxu1 %v2845_v31 }
  0xfe   :  { %1582 = vmatpush1.bf16.msra.mxu0 %v2840_v32  ;;  %1746 = vmatpush1.bf16.msra.mxu1 %v2843_v33 }
  0xff   :  { %1583 = vmatprep.subr.bf16.mxu0 %v2848_v34  ;;  %1747 = vmatprep.subr.bf16.mxu1 %v2851_v35 }
 0x102   :  { %1584 = vmatpush1.bf16.msra.mxu0 %v2846_v36  ;;  %1748 = vmatpush1.bf16.msra.mxu1 %v2849_v37 }
 0x103   :  { %1585 = vmatprep.subr.bf16.mxu0 %v2854_v38  ;;  %1749 = vmatprep.subr.bf16.mxu1 %v2857_v39 }
 0x106   :  { %1586 = vmatpush1.bf16.msra.mxu0 %v2852_v40  ;;  %1750 = vmatpush1.bf16.msra.mxu1 %v2855_v41 }
 0x107   :  { %2435 = vmatprep.subr.bf16.mxu0 %v2859_v42  ;;  %2457 = vmatprep.subr.bf16.mxu1 %v2860_v43 }
 0x109   :  { %1604 = vmatmul.mubr.bf16.vlgmr.msra.gmra.mrb[0].mxu0 %v2858_v44  ;;  %1768 = vmatmul.mubr.bf16.vlgmr.msra.gmra.mrb[0].mxu1 %v2858_v44  ;;  %v2402_v44 = vld [vmem:[%s3125_s4] ss:$0 sm:$0xff]  ;;  %s2947_s4 = scalar_lea.vmem %s2148_s10, 512 }
 0x10a   :  { %2436 = vmatpush3.bf16.msra.mxu0 %v2861_v45  ;;  %2458 = vmatpush3.bf16.msra.mxu1 %v2862_v46  ;;  %p2948_p2 = scmp.ne.s32.totalorder %s2148_s10, %s2947_s4  ;;  %p2953_p4 = scmp.lt.s32.totalorder %s2947_s4, %s2947_s4 }
 0x10b   :  { %2437 = vmatprep.subr.bf16.mxu0 %v2863_v47  ;;  %2459 = vmatprep.subr.bf16.mxu1 %v2864_v48 }
 0x10c   :  { %p2954_p5 = por %p2953_p4, %p2952_p3 }
 0x10e   :  { %2438 = vmatpush3.bf16.msra.mxu0 %v2865_v49  ;;  %2460 = vmatpush3.bf16.msra.mxu1 %v2866_v50  ;;  %p2955_p6 = pnand %p2954_p5, %p2948_p2 }
 0x10f   :  { %2439 = vmatprep.subr.bf16.mxu0 %v2867_v51  ;;  %2461 = vmatprep.subr.bf16.mxu1 %v2868_v52 }
 0x112   :  { %2440 = vmatpush3.bf16.msra.mxu0 %v2869_v53  ;;  %2462 = vmatpush3.bf16.msra.mxu1 %v2870_v54 }
 0x113   :  { %2441 = vmatprep.subr.bf16.mxu0 %v2871_v55  ;;  %2463 = vmatprep.subr.bf16.mxu1 %v2872_v56 }
 0x116   :  { %2442 = vmatpush3.bf16.msra.mxu0 %v2873_v57  ;;  %2464 = vmatpush3.bf16.msra.mxu1 %v2874_v58 }
 0x117   :  { %2443 = vmatprep.subr.bf16.mxu0 %v2875_v59  ;;  %2465 = vmatprep.subr.bf16.mxu1 %v2876_v60 }
 0x11a   :  { %2444 = vmatpush3.bf16.msra.mxu0 %v2877_v61  ;;  %2466 = vmatpush3.bf16.msra.mxu1 %v2878_v62 }
 0x11b   :  { %2445 = vmatprep.subr.bf16.mxu0 %v2879_v63  ;;  %2467 = vmatprep.subr.bf16.mxu1 %v2880_v0 }
 0x11e   :  { %2446 = vmatpush3.bf16.msra.mxu0 %v2881_v1  ;;  %2468 = vmatpush3.bf16.msra.mxu1 %v2882_v2 }
 0x11f   :  { %2447 = vmatprep.subr.bf16.mxu0 %v2883_v3  ;;  %2469 = vmatprep.subr.bf16.mxu1 %v2884_v4 }
 0x122   :  { %2448 = vmatpush3.bf16.msra.mxu0 %v2885_v5  ;;  %2470 = vmatpush3.bf16.msra.mxu1 %v2886_v6 }
 0x123   :  { %2449 = vmatprep.subr.bf16.mxu0 %v2887_v7  ;;  %2471 = vmatprep.subr.bf16.mxu1 %v2888_v8 }
 0x126   :  { %2450 = vmatpush3.bf16.msra.mxu0 %v2889_v9  ;;  %2472 = vmatpush3.bf16.msra.mxu1 %v2890_v10 }
 0x1dc   :  { %v1605_v22 = vpop.f32.mrb[0].mxu0  ;;  %v1769_v23 = vpop.f32.mrb[0].mxu1 }
 0x1dd   :  { %v2479_v24 = vadd.f32 %v1605_v22, %v286_v19  ;;  %v2481_v25 = vadd.f32 %v1769_v23, %v294_v20  ;;  %v1607_v26 = vpop.f32.mrb[1].mxu0  ;;  %v1771_v27 = vpop.f32.mrb[1].mxu1 }
 0x1de   :  { %v2480_v28 = vadd.f32 %v1607_v26, %v290_v11  ;;  %v2482_v29 = vadd.f32 %v1771_v27, %v298_v21  ;;  %v1609_v30 = vpop.f32.mrb[2].mxu0  ;;  %v1773_v31 = vpop.f32.mrb[2].mxu1 }
 0x1df   :  { %2891 = vtanh.f32 %v2479_v24  ;;  %v1610_v32 = vpop.f32.mrb[3].mxu0  ;;  %v1774_v33 = vpop.f32.mrb[3].mxu1 }
 0x1e0   :  { %2893 = vtanh.f32 %v2481_v25 }
 0x1e1   :  { %2895 = vtanh.f32 %v2480_v28 }
 0x1e2   :  { %2897 = vtanh.f32 %v2482_v29 }
 0x1e9   :  { %v2892_v34 = vpop.eup %2891 }
 0x1ea   :  { %v2894_v35 = vpop.eup %2893  ;;  %1780 = vst [vmem:[#allocation7] sm:$0xff] %v2892_v34  ;;  %v1784_v40 = vpack.c.bf16 %v2892_v34, %v2892_v34 }
 0x1eb   :  { %v2896_v36 = vpop.eup %2895  ;;  %1782 = vst [vmem:[#allocation7 + $0x10] sm:$0xff] %v2894_v35  ;;  %v1786_v41 = vpack.c.bf16 %v2894_v35, %v2894_v35 }
 0x1ec   :  { %v2898_v37 = vpop.eup %2897  ;;  %1781 = vst [vmem:[#allocation7 + $0x8] sm:$0xff] %v2896_v36  ;;  %v1785_v38 = vpack.c.bf16 %v2896_v36, %v2896_v36 }
 0x1ed   :  { %1783 = vst [vmem:[#allocation7 + $0x18] sm:$0xff] %v2898_v37  ;;  %v1787_v39 = vpack.c.bf16 %v2898_v37, %v2898_v37 }
 0x1ee   :  { %2083 = vmatprep.mubr.bf16.mxu0 %v1785_v38 }
 0x1ef   :  { %2123 = vmatprep.mubr.bf16.mxu1 %v1787_v39  ;;  %2084 = vmatmul.mubr.bf16.vlgmr.msra.gmra.mrb[4].mxu0 %v1784_v40 }
 0x1f0   :  { %2124 = vmatmul.mubr.bf16.vlgmr.msra.gmra.mrb[4].mxu1 %v1786_v41 }
 0x2c2   :  { %v2451_v42 = vpop.f32.mrb[4].mxu0 }
 0x2c3   :  { %v2473_v43 = vpop.f32.mrb[4].mxu1  ;;  %v2452_v45 = vpop.f32.mrb[5].mxu0 }
 0x2c4   :  { %v2453_v46 = vadd.f32 %v2452_v45, %v2451_v42  ;;  %v2474_v47 = vpop.f32.mrb[5].mxu1  ;;  %v2454_v48 = vpop.f32.mrb[6].mxu0 }
 0x2c5   :  { %v2475_v49 = vadd.f32 %v2474_v47, %v2473_v43  ;;  %v2476_v50 = vpop.f32.mrb[6].mxu1  ;;  %v2455_v51 = vpop.f32.mrb[7].mxu0 }
 0x2c6   :  { %v2086_v52 = vadd.f32 %v2453_v46, %v2402_v44  ;;  %v2477_v53 = vpop.f32.mrb[7].mxu1 }
 0x2c8   :  { %v2126_v54 = vadd.f32 %v2475_v49, %v2086_v52 }
 0x2ca   :  { %2131 = vmax.xlane.f32.xlu0 %v2126_v54 }
 0x357   :  { %v2132_v55 = vpop.xlane.xlu0 %2131 }
 0x358   :  { %v2133_v56 = vsub.f32 %v2126_v54, %v2132_v55 }
 0x35a   :  { %v2134_v57 = vmul.f32 1.442695, %v2133_v56 }
 0x35c   :  { %2899 = vpow2.f32 %v2134_v57 }
 0x366   :  { %v2900_v58 = vpop.eup %2899 }
 0x367   :  { %2136 = vadd.xlane.f32.xlu0 %v2900_v58 }
 0x368   :  { %2958 = shalt.err (!%p2955_p6)
}
 0x369   :  { %s2959_s13 = scalar_lea.hbm %s3126_s5, 512 }
 0x36a   :  { %p2960_p7 = scmp.ne.s32.totalorder %s3126_s5, %s2959_s13  ;;  %p2963_p8 = scmp.lt.u32.totalorder %s2959_s13, %s3126_s5 }
 0x36c   :  { %p2965_p9 = pnand %p2963_p8, %p2960_p7 }
 0x36e   :  { %2968 = shalt.err (!%p2965_p9)
}
 0x36f   :  { %2150 = dma.vmem_to_hbm [thread:$0]  %s2148_s10, 512, %s3126_s5, [#allocation4]  }
 0x370   :  { %s3007_s20 = smov [#allocation8]  }
 0x371   :  { %s2157_s1 = sshll.u32 %s3007_s20, 4  ;;  %s2158_s1 = int_to_ptr.vmem [resolvable:$true] %s2157_s1 }
 0x372   :  { %s2969_s21 = scalar_lea.vmem %s2158_s1, 128  ;;  %p2974_p11 = scmp.lt.s32.totalorder %s2158_s1, %s2158_s1 }
 0x373   :  { %p2970_p10 = scmp.ne.s32.totalorder %s2158_s1, %s2969_s21  ;;  %p2975_p12 = scmp.lt.s32.totalorder %s2969_s21, %s2969_s21 }
 0x375   :  { %p2976_p13 = por %p2975_p12, %p2974_p11 }
 0x377   :  { %p2977_p0 = pnand %p2976_p13, %p2970_p10 }
 0x3f4   :  { %v2137_v59 = vpop.xlane.xlu0 %2136 }
 0x3f5   :  { %2901 = vrcp.f32 %v2137_v59 }
 0x3ff   :  { %v2902_v60 = vpop.eup %2901 }
 0x400   :  { %v2139_v61 = vmul.f32 %v2902_v60, %v2900_v58 }
 0x402   :  { %2140 = vst [vmem:[#allocation8] sm:$0xff] %v2139_v61 }
 0x403   :  { %2980 = shalt.err (!%p2977_p0)
}
 0x404   :  { %s2981_s3 = scalar_lea.hbm %s3127_s6, 128 }
 0x405   :  { %p2982_p1 = scmp.ne.s32.totalorder %s3127_s6, %s2981_s3  ;;  %p2985_p2 = scmp.lt.u32.totalorder %s2981_s3, %s3127_s6 }
 0x407   :  { %p2987_p3 = pnand %p2985_p2, %p2982_p1 }
 0x409   :  { %2990 = shalt.err (!%p2987_p3)
}
 0x40a   :  { %2160 = dma.vmem_to_hbm [thread:$0]  %s2158_s1, 128, %s3127_s6, [#allocation9]  }
 0x40b   :  { %2995 = dma.done.wait [#allocation4], 512  }
 0x40c   :  { %2996 = vsyncadd [#allocation4], 4294966784 }
 0x40d   :  { %2997 = dma.done.wait [#allocation9], 128  }
 0x40e   :  { %2998 = vsyncadd [#allocation9], 4294967168 }
 0x40f   :  { %2167 = vsyncpa [#allocation3], 1 }
 0x410   :  { %2168 = vsyncpa [#allocation6], 1 }
 0x411   :  { %2169 = vsyncpa [#allocation4], 1 }
 0x412   :  { %2170 = vsyncpa [#allocation9], 1 }

</bundles_post_ra>
